<compile_context>
chip_gen: v7x
topology: tpu7x:2x2x1
jax: 0.10.0
libtpu: 0.0.40
codegen_flags: <defaults>
</compile_context>

<pallas_src>
import functools

import jax
import jax.numpy as jnp
from jax.experimental import pallas as pl
from jax.experimental.pallas import tpu as pltpu

_SQRT_HALF = 0.7071067811865476


def _round_up(v, m):
    return ((v + m - 1) // m) * m


def _vmem_capacity_bytes():
    # Generation-aware VMEM capacity (v5e/v6e: 128 MiB, v7x: 64 MiB per TensorCore).
    try:
        return int(pltpu.get_tpu_info().vmem_capacity_bytes)
    except Exception:
        return 64 << 20  # conservative fallback (v7x per-core VMEM)


# ----------------------- main kernel: whole H*W per row tile -----------------------
def _adain_rows_kernel(x_ref, wb_ref, o_ref, *, eps, inv_hw):
    # x_ref/o_ref: (TR, HW) tile; wb_ref: (TR, 2) f32, col 0 = weight, col 1 = bias.
    xf = x_ref[...].astype(jnp.float32)
    mean = jnp.sum(xf, axis=-1, keepdims=True) * inv_hw
    xc = xf - mean                                       # two-pass variance: no cancellation
    var = jnp.sum(xc * xc, axis=-1, keepdims=True) * inv_hw
    scale = jax.lax.rsqrt(var + eps) * wb_ref[:, 0:1]    # (TR, 1) f32
    o_ref[...] = (xc * scale + wb_ref[:, 1:2]).astype(o_ref.dtype)  # f32 apply, cast on store


# ------------------ fallback kernel: spatial tiling, two-phase grid ----------------
def _adain_rows_spatial_kernel(x_ref, wb_ref, o_ref, sum_ref, ssq_ref, *,
                               eps, inv_hw, s_blocks, ts, hw):
    # Grid axis 1 runs 2*s_blocks steps: phase 1 (k < s_blocks) accumulates (sum, sumsq)
    # into VMEM scratch; phase 2 re-streams the same spatial blocks and writes the output.
    k = pl.program_id(1)

    @pl.when(k == 0)
    def _():
        sum_ref[...] = jnp.zeros_like(sum_ref)
        ssq_ref[...] = jnp.zeros_like(ssq_ref)

    @pl.when(k < s_blocks)
    def _():
        xf = x_ref[...].astype(jnp.float32)
        if hw % ts != 0:
            # Last spatial block is ragged: zero out-of-range columns before reducing.
            col = k * ts + jax.lax.broadcasted_iota(jnp.int32, xf.shape, 1)
            xf = jnp.where(col < hw, xf, 0.0)
        sum_ref[...] += jnp.sum(xf, axis=-1, keepdims=True)
        ssq_ref[...] += jnp.sum(xf * xf, axis=-1, keepdims=True)

    @pl.when(k >= s_blocks)
    def _():
        xf = x_ref[...].astype(jnp.float32)
        mean = sum_ref[...] * inv_hw
        var = jnp.maximum(ssq_ref[...] * inv_hw - mean * mean, 0.0)
        scale = jax.lax.rsqrt(var + eps) * wb_ref[:, 0:1]
        shift = wb_ref[:, 1:2] - mean * scale
        o_ref[...] = (xf * scale + shift).astype(o_ref.dtype)  # OOB cols masked by writeback


# --------------------------------- wrapper ------------------------------------------
def adain_norm_pallas(x, weight, bias, eps=1e-5, vmem_budget_bytes=None):
    """group_norm(x, num_groups=C, weight, bias, eps): per-(n,c) stats over H*W."""
    N, C, H, W = x.shape
    HW = H * W
    rows = N * C
    x2 = x.reshape(rows, HW)
    # Fused per-row affine params: column 0 = weight, column 1 = bias (one tiny DMA/step).
    wb = jnp.stack([jnp.tile(weight.astype(jnp.float32), N),
                    jnp.tile(bias.astype(jnp.float32), N)], axis=-1)   # (rows, 2) f32

    itemsize = jnp.dtype(x.dtype).itemsize
    align = 8 * max(1, 4 // itemsize)            # sublane packing: 8 f32 / 16 bf16 / 32 int8
    min_tr = align if rows >= align else rows    # rows < align -> full row dim (legal)
    vmem_cap = _vmem_capacity_bytes()
    budget = int(vmem_budget_bytes) if vmem_budget_bytes is not None else int(vmem_cap * 0.7)
    blk_cols = _round_up(HW, 128)                # padded lane allocation of a full-HW tile
    row_unit = 4 * itemsize + 8                  # 2x dbuf in + 2x dbuf out + ~2 f32 temps

    inv_hw = 1.0 / float(HW)
    eps = float(eps)

    if blk_cols * row_unit * min_tr <= budget:
        # ----------- main path: exact per-row stats, whole H*W in one tile -----------
        if rows < align:
            tr = rows
        else:
            tr = (budget // (blk_cols * row_unit)) // align * align
            tr = min(max(tr, align), (rows // align) * align)
            if rows >= 2 * align:                 # keep >= 2 row blocks for v7x's 2 TCs
                tr = min(tr, _round_up(pl.cdiv(rows, 2), align))
        grid = (pl.cdiv(rows, tr),)

        vmem_need = tr * blk_cols * row_unit + 4 * tr * 512
        vmem_limit = max(vmem_need + (8 << 20), 32 << 20)
        vmem_limit = int(min(vmem_limit, max(vmem_cap - (2 << 20), vmem_need + (1 << 20))))

        kernel = functools.partial(_adain_rows_kernel, eps=eps, inv_hw=inv_hw)
        out = pl.pallas_call(
            kernel,
            out_shape=jax.ShapeDtypeStruct((rows, HW), x.dtype),
            grid_spec=pltpu.PrefetchScalarGridSpec(
                num_scalar_prefetch=0,
                grid=grid,
                in_specs=[
                    pl.BlockSpec((tr, HW), lambda i: (i, 0)),  # last dim == full dim: no pad copy
                    pl.BlockSpec((tr, 2), lambda i: (i, 0)),
                ],
                out_specs=pl.BlockSpec((tr, HW), lambda i: (i, 0)),
            ),
            compiler_params=pltpu.CompilerParams(
                dimension_semantics=("parallel",),
                vmem_limit_bytes=vmem_limit,
            ),
        )(x2, wb)
    else:
        # ---- fallback (very large H*W, e.g. v7x 64 MiB VMEM): tile the spatial axis ----
        tr = min_tr
        ts = (budget // (tr * row_unit)) // 128 * 128
        ts = max(128, min(ts, _round_up(HW, 128)))
        s_blocks = pl.cdiv(HW, ts)
        grid = (pl.cdiv(rows, tr), 2 * s_blocks)

        vmem_need = tr * ts * row_unit + 4 * tr * 512 + 2 * tr * 512
        vmem_limit = max(vmem_need + (8 << 20), 32 << 20)
        vmem_limit = int(min(vmem_limit, max(vmem_cap - (2 << 20), vmem_need + (1 << 20))))

        kernel = functools.partial(_adain_rows_spatial_kernel, eps=eps, inv_hw=inv_hw,
                                   s_blocks=s_blocks, ts=ts, hw=HW)
        out = pl.pallas_call(
            kernel,
            out_shape=jax.ShapeDtypeStruct((rows, HW), x.dtype),
            grid_spec=pltpu.PrefetchScalarGridSpec(
                num_scalar_prefetch=0,
                grid=grid,
                in_specs=[
                    pl.BlockSpec(
                        (tr, ts),
                        lambda i, k: (i, jnp.where(k < s_blocks, k, k - s_blocks))),
                    pl.BlockSpec((tr, 2), lambda i, k: (i, 0)),
                ],
                out_specs=pl.BlockSpec(
                    (tr, ts),
                    lambda i, k: (i, jnp.where(k < s_blocks, 0, k - s_blocks))),
                scratch_shapes=[pltpu.VMEM((tr, 1), jnp.float32),
                                pltpu.VMEM((tr, 1), jnp.float32)],
            ),
            compiler_params=pltpu.CompilerParams(
                dimension_semantics=("parallel", "arbitrary"),
                vmem_limit_bytes=vmem_limit,
            ),
        )(x2, wb)

    return out.reshape(N, C, H, W)


# ------------------------------ MLP (plain jnp) --------------------------------------
def mlp_affine_params(embedding, params, in_channels):
    # M=1 GEMV chain: XLA fuses this fine; not worth a Pallas launch.
    e = embedding.astype(jnp.float32)
    h = e @ params["w1"].astype(jnp.float32) + params["b1"].astype(jnp.float32)
    h = 0.5 * h * (1.0 + jax.lax.erf(h * jnp.float32(_SQRT_HALF)))  # exact GELU
    wb = h @ params["w2"].astype(jnp.float32) + params["b2"].astype(jnp.float32)
    return wb[:in_channels], wb[in_channels:]


# ------------------------------- AdaIN forward ---------------------------------------
def adain_forward(x, embedding, params, eps=1e-5):
    C = x.shape[1]
    weight, bias = mlp_affine_params(embedding, params, C)
    return adain_norm_pallas(x, weight, bias, eps=eps)


# ------------------------------ Pure-JAX reference ------------------------------------
def group_norm_reference(x, weight, bias, eps):
    C = x.shape[1]
    mean = jnp.mean(x, axis=(2, 3), keepdims=True)
    var = jnp.mean((x - mean) ** 2, axis=(2, 3), keepdims=True)
    xn = (x - mean) * jax.lax.rsqrt(var + eps)
    return xn * weight.reshape(1, C, 1, 1) + bias.reshape(1, C, 1, 1)


def adain_reference(x, embedding, params, eps=1e-5):
    C = x.shape[1]
    weight, bias = mlp_affine_params(embedding, params, C)
    return group_norm_reference(x, weight, bias, eps)


if __name__ == "__main__":
    # Shapes consistent with the module: embed_dim=32, in_channels=4, x: (2, 4, 16, 16)
    embed_dim, in_channels, hidden = 32, 4, 512
    N, H, W = 2, 16, 16
    eps = 1e-5

    key = jax.random.PRNGKey(0)
    k_x, k_e, k_w1, k_b1, k_w2, k_b2, k_x2, k_w, k_b = jax.random.split(key, 9)

    x = jax.random.normal(k_x, (N, in_channels, H, W), dtype=jnp.float32)
    embedding = jax.random.normal(k_e, (embed_dim,), dtype=jnp.float32)
    params = {
        "w1": jax.random.normal(k_w1, (embed_dim, hidden), dtype=jnp.float32) * 0.05,
        "b1": jax.random.normal(k_b1, (hidden,), dtype=jnp.float32) * 0.05,
        "w2": jax.random.normal(k_w2, (hidden, 2 * in_channels), dtype=jnp.float32) * 0.05,
        "b2": jax.random.normal(k_b2, (2 * in_channels,), dtype=jnp.float32) * 0.05,
    }

    fwd = jax.jit(functools.partial(adain_forward, eps=eps))
    out = jax.block_until_ready(fwd(x, embedding, params))
    ref = adain_reference(x, embedding, params, eps=eps)
    assert out.shape == ref.shape == (N, in_channels, H, W)
    assert jnp.allclose(out, ref, atol=1e-4, rtol=1e-4), "Pallas AdaIN mismatch vs reference"

    # Exercise the v7x spatial-tiling fallback (forced tiny VMEM budget, ragged H*W tail).
    x_b = jax.random.normal(k_x2, (2, 8, 20, 20), dtype=jnp.float32)
    w_b = jax.random.normal(k_w, (8,), dtype=jnp.float32)
    b_b = jax.random.normal(k_b, (8,), dtype=jnp.float32)
    out_b = jax.block_until_ready(
        adain_norm_pallas(x_b, w_b, b_b, eps=eps, vmem_budget_bytes=64 * 1024))
    ref_b = group_norm_reference(x_b, w_b, b_b, eps)
    assert jnp.allclose(out_b, ref_b, atol=1e-4, rtol=1e-4), "fallback mismatch vs reference"

    print("KERNEL_OK")
</pallas_src>

<mosaic_0001>
module attributes {stable_mosaic.version = 11 : i64} {
  func.func @_adain_rows_kernel(%arg0: i32, %arg1: memref<8x256xf32, #tpu.memory_space<vmem>>, %arg2: memref<8x2xf32, #tpu.memory_space<vmem>>, %arg3: memref<8x256xf32, #tpu.memory_space<vmem>>) attributes {dimension_semantics = [#tpu.dimension_semantics<parallel>], iteration_bounds = array<i64: 1>, scalar_prefetch = 0 : i64, scratch_operands = 0 : i64, tpu.core_type = #tpu.core_type<tc>, window_params = [{transform_indices = @transform_0, window_bounds = array<i64: 8, 256>}, {transform_indices = @transform_1, window_bounds = array<i64: 8, 2>}, {transform_indices = @transform_2, window_bounds = array<i64: 8, 256>}]} {
    %c0 = arith.constant 0 : index
    %c0_0 = arith.constant 0 : index
    %0 = vector.load %arg1[%c0, %c0_0] : memref<8x256xf32, #tpu.memory_space<vmem>>, vector<8x256xf32>
    %cst = arith.constant dense<0.000000e+00> : vector<8xf32>
    %1 = vector.multi_reduction <add>, %0, %cst [1] : vector<8x256xf32> to vector<8xf32>
    %2 = vector.shape_cast %1 : vector<8xf32> to vector<8x1xf32>
    %cst_1 = arith.constant 3.906250e-03 : f32
    %3 = vector.broadcast %cst_1 : f32 to vector<8x1xf32>
    %4 = arith.mulf %2, %3 : vector<8x1xf32>
    %5 = vector.broadcast %4 : vector<8x1xf32> to vector<8x256xf32>
    %6 = arith.subf %0, %5 : vector<8x256xf32>
    %7 = arith.mulf %6, %6 : vector<8x256xf32>
    %cst_2 = arith.constant dense<0.000000e+00> : vector<8xf32>
    %8 = vector.multi_reduction <add>, %7, %cst_2 [1] : vector<8x256xf32> to vector<8xf32>
    %9 = vector.shape_cast %8 : vector<8xf32> to vector<8x1xf32>
    %cst_3 = arith.constant 3.906250e-03 : f32
    %10 = vector.broadcast %cst_3 : f32 to vector<8x1xf32>
    %11 = arith.mulf %9, %10 : vector<8x1xf32>
    %cst_4 = arith.constant 9.99999974E-6 : f32
    %12 = vector.broadcast %cst_4 : f32 to vector<8x1xf32>
    %13 = arith.addf %11, %12 : vector<8x1xf32>
    %14 = math.rsqrt %13 : vector<8x1xf32>
    %c0_5 = arith.constant 0 : index
    %c0_6 = arith.constant 0 : index
    %15 = vector.load %arg2[%c0_5, %c0_6] : memref<8x2xf32, #tpu.memory_space<vmem>>, vector<8x1xf32>
    %16 = arith.mulf %14, %15 : vector<8x1xf32>
    %17 = vector.broadcast %16 : vector<8x1xf32> to vector<8x256xf32>
    %18 = arith.mulf %6, %17 : vector<8x256xf32>
    %c0_7 = arith.constant 0 : index
    %c1 = arith.constant 1 : index
    %19 = vector.load %arg2[%c0_7, %c1] : memref<8x2xf32, #tpu.memory_space<vmem>>, vector<8x1xf32>
    %20 = vector.broadcast %19 : vector<8x1xf32> to vector<8x256xf32>
    %21 = arith.addf %18, %20 : vector<8x256xf32>
    %c0_8 = arith.constant 0 : index
    %c0_9 = arith.constant 0 : index
    %22 = vector.load %arg3[%c0_8, %c0_9] : memref<8x256xf32, #tpu.memory_space<vmem>>, vector<8x256xf32>
    tpu.vector_store %arg3[%c0_8, %c0_9], %21 {strides = array<i32>} : memref<8x256xf32, #tpu.memory_space<vmem>>, vector<8x256xf32>,
    return
  }
  func.func @transform_0(%arg0: i32) -> (i32, i32) {
    %c0_i32 = arith.constant 0 : i32
    %c0_i32_0 = arith.constant 0 : i32
    return %arg0, %c0_i32 : i32, i32
  }
  func.func @transform_1(%arg0: i32) -> (i32, i32) {
    %c0_i32 = arith.constant 0 : i32
    %c0_i32_0 = arith.constant 0 : i32
    return %arg0, %c0_i32 : i32, i32
  }
  func.func @transform_2(%arg0: i32) -> (i32, i32) {
    %c0_i32 = arith.constant 0 : i32
    %c0_i32_0 = arith.constant 0 : i32
    return %arg0, %c0_i32 : i32, i32
  }
}

</mosaic_0001>

<bundles_post_ra>
// kernel: tile.13
= control target key start
LH: loop header
LB: loop body
LE: loop exit
PB: predicated region body
PF: predicated region fallthrough
CT: control target
= control target key end

     0   :  { %s22_s0 = inlined_call_operand.vmem [shape: f32[4], index: 0, kind: input, shape index: {}]   ;;  %s23_s1 = inlined_call_operand.vmem [shape: f32[2,4], index: 1, kind: output, shape index: {}]  }
   0x1   :  { %v4_v0 = vld [vmem:[%s22_s0] ss:$0 sm:$0xff] }
   0x2   :  { %5 = vst [vmem:[%s23_s1] sm:$0x3] %v4_v0 }

// kernel: tile.18
= control target key start
LH: loop header
LB: loop body
LE: loop exit
PB: predicated region body
PF: predicated region fallthrough
CT: control target
= control target key end

     0   :  { %vm7_vm0 = vcmask 31744   ;;  %vm13_vm1 = vcmask 64544   ;;  %s39_s0 = inlined_call_operand.vmem [shape: f32[2,4], index: 0, kind: input, shape index: {}]   ;;  %s40_s1 = inlined_call_operand.vmem [shape: f32[8,1], index: 1, kind: output, shape index: {}]  }
   0x1   :  { %v4_v0 = vld [vmem:[%s39_s0] sm:$0x3]  ;;  %s22_s0 = smov 4  }
   0x2   :  { %5 = vst [vmem:[#allocation1] sm:$0x3] %v4_v0 }
   0x9   :  { %v10_v1 = vld [vmem:[#allocation1 + $0x1] sm:$0x1]   ;;  %v6_v2 = vld [vmem:[#allocation1] sm:$0x1]  }
   0xa   :  { %11 = vrot.lane.b32.xlu0 %v10_v1, %s22_s0  ;;  %8 = vst.msk [vmem:[#allocation0] sm:$0x1] %vm7_vm0, %v6_v2  }
  0x7c   :  { %v12_v3 = vpop.permute.xlu0 %11  }
  0x7d   :  { %14 = vst.msk [vmem:[#allocation0] sm:$0x1] %vm13_vm1, %v12_v3  }
  0x84   :  { %v18_v4 = vld [vmem:[#allocation0] sm:$0x1] }
  0x85   :  { %20 = vst [vmem:[%s40_s1] sm:$0x1] %v18_v4 }

// kernel: adain_forward.1
= control target key start
LH: loop header
LB: loop body
LE: loop exit
PB: predicated region body
PF: predicated region fallthrough
CT: control target
= control target key end

     0   :  { %v56_v10 = vmov 0   ;;  %v57_v11 = vmov 1   ;;  %s88_s0 = inlined_call_operand.vmem [shape: f32[8,256], index: 0, kind: input, shape index: {}]   ;;  %s89_s1 = inlined_call_operand.vmem [shape: f32[8,2], index: 1, kind: input, shape index: {}]   ;;  %s90_s2 = inlined_call_operand.vmem [shape: f32[8,256], index: 2, kind: output, shape index: {}]  }
   0x1   :  { %v11_v0 = vld [vmem:[%s88_s0] sm:$0xff]  ;;  %v12_v1 = vld [vmem:[%s88_s0 + $0x8] sm:$0xff]  ;;  %51 = vset.pattern.permute.xlu1 %v56_v10  ;;  %53 = vset.pattern.permute.xlu0 %v57_v11 }
   0x2   :  { %v13_v2 = vadd.f32 %v12_v1, %v11_v0  ;;  %v27_v15 = vld [vmem:[%s89_s1] sm:$0xff] }
   0x4   :  { %14 = vadd.xlane.f32.xlu0 %v13_v2 }
  0x91   :  { %v15_v3 = vpop.xlane.xlu0 %14 }
  0x92   :  { %v16_v4 = vmul.f32 0.00390625, %v15_v3 }
  0x94   :  { %v17_v5 = vsub.f32 %v11_v0, %v16_v4  ;;  %v18_v6 = vsub.f32 %v12_v1, %v16_v4 }
  0x96   :  { %v19_v7 = vmul.f32 %v17_v5, %v17_v5  ;;  %v20_v8 = vmul.f32 %v18_v6, %v18_v6 }
  0x98   :  { %v21_v9 = vadd.f32 %v20_v8, %v19_v7 }
  0x9a   :  { %22 = vadd.xlane.f32.xlu0 %v21_v9 }
 0x127   :  { %v23_v12 = vpop.xlane.xlu0 %22 }
 0x128   :  { %v24_v13 = vmul.f32 0.00390625, %v23_v12 }
 0x12a   :  { %v25_v14 = vadd.f32 1e-05, %v24_v13 }
 0x12c   :  { %54 = vrsqrt.f32 %v25_v14 }
 0x136   :  { %v55_v16 = vpop.eup %54 }
 0x137   :  { %v28_v17 = vmul.f32 %v55_v16, %v27_v15 }
 0x139   :  { %31 = vperm.xlu1 %51, %v28_v17  }
 0x13d   :  { %52 = vset.pattern.permute.xlu1 %v57_v11 }
 0x13e   :  { %38 = vperm.xlu1 %52, %v27_v15  }
 0x1b8   :  { %v32_v18 = vpop.permute.xlu1 %31 }
 0x1b9   :  { %v34_v19 = vmul.f32 %v32_v18, %v17_v5  ;;  %v35_v20 = vmul.f32 %v32_v18, %v18_v6 }
 0x1bd   :  { %v39_v21 = vpop.permute.xlu1 %38 }
 0x1be   :  { %v41_v22 = vadd.f32 %v39_v21, %v34_v19  ;;  %v42_v23 = vadd.f32 %v39_v21, %v35_v20 }
 0x1c0   :  { %43 = vst [vmem:[%s90_s2] sm:$0xff] %v41_v22  ;;  %44 = vst [vmem:[%s90_s2 + $0x8] sm:$0xff] %v42_v23 }

</bundles_post_ra>
